<compile_context>
chip_gen: v6e
topology: v6e:2x2x1
jax: 0.10.0
libtpu: 0.0.40
codegen_flags: <defaults>
</compile_context>

<pallas_src>
import numpy as np
import jax
import jax.numpy as jnp
from jax.experimental import pallas as pl
from jax.experimental.pallas import tpu as pltpu

# ---- small synthetic dims (real module uses IMG_CHANNELS*H*W = 2048*7*7 = 100352;
# ---- hidden sizes 256 / 128 are fixed by the module) ----
IMG_CHANNELS = 32
IMG_HEIGHT = 4
IMG_WIDTH = 4
D_IN = IMG_CHANNELS * IMG_HEIGHT * IMG_WIDTH   # fc1 input features (512 here)
H1 = 256                                       # fc1 output features
H2 = 128                                       # after max_pool1d(2,2); BatchNorm1d(128); fc4 input
NUM_LABELS = 4                                 # len(ClassConstants().LABELS) -- synthetic
H3 = 2 * NUM_LABELS                            # fc4 output features
BN_EPS = 1e-5

OUT_PAD = 128                                  # lane-dense output width (>= 128)
HALF = OUT_PAD // 2

N = 8                                          # batch (numROIs)
TK = D_IN if D_IN <= 8192 else 2048            # fc1 reduction tile; must divide D_IN
assert D_IN % TK == 0
assert D_IN % 128 == 0


def classifier_kernel(x_ref, w1_ref, b1_ref, w4_ref, b4_ref, o_ref, acc_ref):
    k = pl.program_id(1)

    # ---- fc1, K-tiled f32 accumulation (bf16 inputs on the MXU) ----
    @pl.when(k == 0)
    def _init():
        acc_ref[...] = jnp.zeros_like(acc_ref)

    acc_ref[...] += jnp.dot(x_ref[...], w1_ref[...], preferred_element_type=jnp.float32)

    @pl.when(k == pl.num_programs(1) - 1)
    def _finalize():
        # fc1 bias + ReLU (f32)
        h = jnp.maximum(acc_ref[...] + b1_ref[...], 0.0)
        # max_pool1d(2,2): columns are pair-permuted (even | odd) -> half-vs-half max
        h = jnp.maximum(h[:, :H2], h[:, H2:])
        # Dropout(p=0.5): identity at inference.  BatchNorm1d(128) eval: folded into fc4.
        # fc4 (+ folded BN) + bias + ReLU; weights padded to 128 lane-dense columns with
        # even cols at lanes [0:L] and odd cols at lanes [HALF:HALF+L].
        z = jnp.dot(h.astype(jnp.bfloat16), w4_ref[...],
                    preferred_element_type=jnp.float32) + b4_ref[...]
        z = jnp.maximum(z, 0.0)
        # max_pool1d(2,2): XLU half-rotation pairs lane j with lane HALF+j.
        zp = jnp.maximum(z, pltpu.roll(z, shift=HALF, axis=1))
        # log_softmax(dim=1) over the first NUM_LABELS lanes (rest is padding)
        lane = jax.lax.broadcasted_iota(jnp.int32, zp.shape, 1)
        valid = lane < NUM_LABELS
        m = jnp.max(jnp.where(valid, zp, -jnp.inf), axis=1, keepdims=True)
        s = zp - m
        denom = jnp.sum(jnp.where(valid, jnp.exp(s), 0.0), axis=1, keepdims=True)
        o_ref[...] = (s - jnp.log(denom)).astype(o_ref.dtype)


def prepare_params(params):
    """One-time (outside the jitted per-call path): BN fold, pool permutations, bf16 casts."""
    w1, b1, gamma, beta, run_mean, run_var, w4, b4 = params

    # Fold eval-mode BatchNorm1d into fc4:  bn(h) = h*scale + shift
    scale = gamma * jax.lax.rsqrt(run_var + BN_EPS)
    shift = beta - run_mean * scale
    w4f = w4 * scale[:, None]                  # (H2, H3)
    b4f = shift @ w4 + b4                      # (H3,)

    # fc1: permute output columns so pooling pairs (2i,2i+1) become (i, H2+i).
    p1 = np.concatenate([np.arange(0, H1, 2), np.arange(1, H1, 2)])
    w1p = jnp.asarray(w1)[:, p1].astype(jnp.bfloat16)              # (D_IN, H1) bf16
    b1p = jnp.asarray(b1)[p1].reshape(1, H1).astype(jnp.float32)   # (1, H1)   f32

    # fc4: even cols -> lanes [0:L], odd cols -> lanes [HALF:HALF+L], zeros elsewhere
    even = np.arange(0, H3, 2)
    odd = np.arange(1, H3, 2)
    w4_pad = jnp.zeros((H2, OUT_PAD), jnp.float32)
    w4_pad = w4_pad.at[:, :NUM_LABELS].set(w4f[:, even])
    w4_pad = w4_pad.at[:, HALF:HALF + NUM_LABELS].set(w4f[:, odd])
    b4_pad = jnp.zeros((1, OUT_PAD), jnp.float32)
    b4_pad = b4_pad.at[0, :NUM_LABELS].set(b4f[even])
    b4_pad = b4_pad.at[0, HALF:HALF + NUM_LABELS].set(b4f[odd])

    return (w1p, b1p, w4_pad.astype(jnp.bfloat16), b4_pad)


@jax.jit
def classifier_forward(x, prepared):
    w1p, b1p, w4p, b4p = prepared
    n = x.shape[0]

    # Adaptive batch tile: full 128-row MXU occupancy for big batches, minimal zero-pad
    # (multiple of 8 sublanes) for small ROI counts.
    tn = min(128, ((n + 7) // 8) * 8)
    n_pad = ((n + tn - 1) // tn) * tn

    xb = x.astype(jnp.bfloat16)
    if n_pad != n:
        xb = jnp.pad(xb, ((0, n_pad - n), (0, 0)))

    grid = (n_pad // tn, D_IN // TK)
    full = lambda i, k: (0, 0)   # grid-invariant parameter blocks

    out = pl.pallas_call(
        classifier_kernel,
        out_shape=jax.ShapeDtypeStruct((n_pad, OUT_PAD), jnp.float32),
        grid_spec=pltpu.PrefetchScalarGridSpec(
            num_scalar_prefetch=0,
            grid=grid,
            in_specs=[
                pl.BlockSpec((tn, TK), lambda i, k: (i, k)),       # x tile (bf16)
                pl.BlockSpec((TK, H1), lambda i, k: (k, 0)),       # w1 (bf16, pool-permuted)
                pl.BlockSpec((1, H1), full),                       # b1 (f32, pool-permuted)
                pl.BlockSpec((H2, OUT_PAD), full),                 # w4 (bf16, BN-folded, padded)
                pl.BlockSpec((1, OUT_PAD), full),                  # b4 (f32, BN-folded, padded)
            ],
            out_specs=pl.BlockSpec((tn, OUT_PAD), lambda i, k: (i, 0)),
            scratch_shapes=[pltpu.VMEM((tn, H1), jnp.float32)],    # fc1 accumulator
        ),
        compiler_params=pltpu.CompilerParams(
            dimension_semantics=("parallel", "arbitrary")),
    )(xb, w1p, b1p, w4p, b4p)

    # slice away batch padding and the lane padding of the lane-dense output block
    return out[:n, :NUM_LABELS]


def reference_forward(x, params):
    """Pure-JAX f32 reference matching PyTorch eval-mode semantics."""
    w1, b1, gamma, beta, run_mean, run_var, w4, b4 = params
    h = x @ w1 + b1
    h = jnp.maximum(h, 0.0)
    h = h.reshape(h.shape[0], H2, 2).max(axis=-1)            # max_pool1d(2, 2)
    # dropout: identity (eval)
    h = (h - run_mean) * jax.lax.rsqrt(run_var + BN_EPS) * gamma + beta
    z = h @ w4 + b4
    z = jnp.maximum(z, 0.0)
    z = z.reshape(z.shape[0], NUM_LABELS, 2).max(axis=-1)    # max_pool1d(2, 2)
    return jax.nn.log_softmax(z, axis=1)


def init_params(key):
    ks = jax.random.split(key, 8)
    w1 = jax.random.normal(ks[0], (D_IN, H1), jnp.float32) * (1.0 / jnp.sqrt(D_IN))
    b1 = jax.random.normal(ks[1], (H1,), jnp.float32) * 0.01
    gamma = 1.0 + 0.1 * jax.random.normal(ks[2], (H2,), jnp.float32)
    beta = 0.1 * jax.random.normal(ks[3], (H2,), jnp.float32)
    run_mean = 0.05 * jax.random.normal(ks[4], (H2,), jnp.float32)
    run_var = 1.0 + 0.1 * jax.random.uniform(ks[5], (H2,), jnp.float32)
    w4 = jax.random.normal(ks[6], (H2, H3), jnp.float32) * (1.0 / jnp.sqrt(H2))
    b4 = jax.random.normal(ks[7], (H3,), jnp.float32) * 0.01
    return (w1, b1, gamma, beta, run_mean, run_var, w4, b4)


if __name__ == "__main__":
    key = jax.random.PRNGKey(0)
    k_x, k_p = jax.random.split(key)
    # x: flattened ROI features, shape (numROIs, IMG_CHANNELS*H*W)
    x = jax.random.normal(k_x, (N, D_IN), jnp.float32)
    params = init_params(k_p)

    prepared = prepare_params(params)        # one-time weight prep (BN fold, permute, bf16)
    out = classifier_forward(x, prepared)
    out = jax.block_until_ready(out)

    ref = reference_forward(x, params)
    assert out.shape == (N, NUM_LABELS)
    # bf16 matmul inputs -> loosened tolerance vs the f32 reference
    assert jnp.allclose(out, ref, atol=5e-2, rtol=5e-2), "mismatch vs JAX reference"

    # TODO(synk): Dropout RNG and BatchNorm training-time batch statistics are out of scope;
    # the kernel implements eval-mode inference (dropout identity, BN folded into fc4).
    print("KERNEL_OK")
</pallas_src>

<mosaic_0001>
module attributes {stable_mosaic.version = 11 : i64} {
  func.func @classifier_kernel(%arg0: i32, %arg1: i32, %arg2: memref<8x512xbf16, #tpu.memory_space<vmem>>, %arg3: memref<512x256xbf16, #tpu.memory_space<vmem>>, %arg4: memref<1x256xf32, #tpu.memory_space<vmem>>, %arg5: memref<128x128xbf16, #tpu.memory_space<vmem>>, %arg6: memref<1x128xf32, #tpu.memory_space<vmem>>, %arg7: memref<8x128xf32, #tpu.memory_space<vmem>>, %arg8: memref<8x256xf32, #tpu.memory_space<vmem>>) attributes {dimension_semantics = [#tpu.dimension_semantics<parallel>, #tpu.dimension_semantics<arbitrary>], iteration_bounds = array<i64: 1, 1>, scalar_prefetch = 0 : i64, scratch_operands = 1 : i64, tpu.core_type = #tpu.core_type<tc>, window_params = [{transform_indices = @transform_0, window_bounds = array<i64: 8, 512>}, {transform_indices = @transform_1, window_bounds = array<i64: 512, 256>}, {pipeline_mode = #tpu.pipeline_mode<synchronous>, transform_indices = @transform_2, window_bounds = array<i64: 1, 256>}, {pipeline_mode = #tpu.pipeline_mode<synchronous>, transform_indices = @transform_3, window_bounds = array<i64: 128, 128>}, {pipeline_mode = #tpu.pipeline_mode<synchronous>, transform_indices = @transform_4, window_bounds = array<i64: 1, 128>}, {transform_indices = @transform_5, window_bounds = array<i64: 8, 128>}]} {
    %c0_i32 = arith.constant 0 : i32
    %0 = arith.cmpi eq, %arg1, %c0_i32 : i32
    %1 = arith.extui %0 : i1 to i32
    %c0_i32_0 = arith.constant 0 : i32
    %2 = arith.cmpi ne, %1, %c0_i32_0 : i32
    scf.if %2 {
      %cst_10 = arith.constant 0.000000e+00 : f32
      %12 = vector.broadcast %cst_10 : f32 to vector<8x256xf32>
      %c0_11 = arith.constant 0 : index
      %c0_12 = arith.constant 0 : index
      %13 = vector.load %arg8[%c0_11, %c0_12] : memref<8x256xf32, #tpu.memory_space<vmem>>, vector<8x256xf32>
      tpu.vector_store %arg8[%c0_11, %c0_12], %12 {strides = array<i32>} : memref<8x256xf32, #tpu.memory_space<vmem>>, vector<8x256xf32>,
    } else {
    }
    %c0 = arith.constant 0 : index
    %c0_1 = arith.constant 0 : index
    %3 = vector.load %arg8[%c0, %c0_1] : memref<8x256xf32, #tpu.memory_space<vmem>>, vector<8x256xf32>
    %c0_2 = arith.constant 0 : index
    %c0_3 = arith.constant 0 : index
    %4 = vector.load %arg2[%c0_2, %c0_3] : memref<8x512xbf16, #tpu.memory_space<vmem>>, vector<8x512xbf16>
    %c0_4 = arith.constant 0 : index
    %c0_5 = arith.constant 0 : index
    %5 = vector.load %arg3[%c0_4, %c0_5] : memref<512x256xbf16, #tpu.memory_space<vmem>>, vector<512x256xbf16>
    %cst = arith.constant dense<0.000000e+00> : vector<8x256xf32>
    %6 = tpu.matmul %4, %5, %cst {dimension_numbers = #tpu.dot_dimension_numbers<[1], [0], [0], [1], [0, 0, 1, 1], [], []>} : vector<8x512xbf16>, vector<512x256xbf16>, vector<8x256xf32> -> vector<8x256xf32>
    %7 = arith.addf %3, %6 : vector<8x256xf32>
    %c0_6 = arith.constant 0 : index
    %c0_7 = arith.constant 0 : index
    %8 = vector.load %arg8[%c0_6, %c0_7] : memref<8x256xf32, #tpu.memory_space<vmem>>, vector<8x256xf32>
    tpu.vector_store %arg8[%c0_6, %c0_7], %7 {strides = array<i32>} : memref<8x256xf32, #tpu.memory_space<vmem>>, vector<8x256xf32>,
    %c0_i32_8 = arith.constant 0 : i32
    %9 = arith.cmpi eq, %arg1, %c0_i32_8 : i32
    %10 = arith.extui %9 : i1 to i32
    %c0_i32_9 = arith.constant 0 : i32
    %11 = arith.cmpi ne, %10, %c0_i32_9 : i32
    scf.if %11 {
      %c0_10 = arith.constant 0 : index
      %c0_11 = arith.constant 0 : index
      %12 = vector.load %arg8[%c0_10, %c0_11] : memref<8x256xf32, #tpu.memory_space<vmem>>, vector<8x256xf32>
      %c0_12 = arith.constant 0 : index
      %c0_13 = arith.constant 0 : index
      %13 = vector.load %arg4[%c0_12, %c0_13] : memref<1x256xf32, #tpu.memory_space<vmem>>, vector<1x256xf32>
      %14 = vector.broadcast %13 : vector<1x256xf32> to vector<8x256xf32>
      %15 = arith.addf %12, %14 : vector<8x256xf32>
      %cst_14 = arith.constant 0.000000e+00 : f32
      %16 = vector.broadcast %cst_14 : f32 to vector<8x256xf32>
      %17 = arith.maximumf %15, %16 : vector<8x256xf32>
      %18 = vector.extract_strided_slice %17 {offsets = [0, 0], sizes = [8, 128], strides = [1, 1]} : vector<8x256xf32> to vector<8x128xf32>
      %19 = vector.extract_strided_slice %17 {offsets = [0, 128], sizes = [8, 128], strides = [1, 1]} : vector<8x256xf32> to vector<8x128xf32>
      %20 = arith.maximumf %18, %19 : vector<8x128xf32>
      %21 = arith.truncf %20 : vector<8x128xf32> to vector<8x128xbf16>
      %c0_15 = arith.constant 0 : index
      %c0_16 = arith.constant 0 : index
      %22 = vector.load %arg5[%c0_15, %c0_16] : memref<128x128xbf16, #tpu.memory_space<vmem>>, vector<128x128xbf16>
      %cst_17 = arith.constant dense<0.000000e+00> : vector<8x128xf32>
      %23 = tpu.matmul %21, %22, %cst_17 {dimension_numbers = #tpu.dot_dimension_numbers<[1], [0], [0], [1], [0, 0, 1, 1], [], []>} : vector<8x128xbf16>, vector<128x128xbf16>, vector<8x128xf32> -> vector<8x128xf32>
      %c0_18 = arith.constant 0 : index
      %c0_19 = arith.constant 0 : index
      %24 = vector.load %arg6[%c0_18, %c0_19] : memref<1x128xf32, #tpu.memory_space<vmem>>, vector<1x128xf32>
      %25 = vector.broadcast %24 : vector<1x128xf32> to vector<8x128xf32>
      %26 = arith.addf %23, %25 : vector<8x128xf32>
      %cst_20 = arith.constant 0.000000e+00 : f32
      %27 = vector.broadcast %cst_20 : f32 to vector<8x128xf32>
      %28 = arith.maximumf %26, %27 : vector<8x128xf32>
      %c64_i32 = arith.constant 64 : i32
      %29 = tpu.dynamic_rotate %28 by %c64_i32 dim 1 : vector<8x128xf32>, i32 -> vector<8x128xf32>
      %30 = arith.maximumf %28, %29 : vector<8x128xf32>
      %31 = tpu.iota {dimensions = array<i32: 1>} : vector<8x128xi32>
      %c4_i32 = arith.constant 4 : i32
      %32 = vector.broadcast %c4_i32 : i32 to vector<8x128xi32>
      %33 = arith.cmpi slt, %31, %32 : vector<8x128xi32>
      %cst_21 = arith.constant 0xFF800000 : f32
      %34 = vector.broadcast %cst_21 : f32 to vector<8x128xf32>
      %35 = arith.select %33, %30, %34 : vector<8x128xi1>, vector<8x128xf32>
      %cst_22 = arith.constant dense<0xFF800000> : vector<8xf32>
      %36 = vector.multi_reduction <maximumf>, %35, %cst_22 [1] : vector<8x128xf32> to vector<8xf32>
      %37 = vector.shape_cast %36 : vector<8xf32> to vector<8x1xf32>
      %38 = vector.broadcast %37 : vector<8x1xf32> to vector<8x128xf32>
      %39 = arith.subf %30, %38 : vector<8x128xf32>
      %40 = math.exp %39 : vector<8x128xf32>
      %cst_23 = arith.constant 0.000000e+00 : f32
      %41 = vector.broadcast %cst_23 : f32 to vector<8x128xf32>
      %42 = arith.select %33, %40, %41 : vector<8x128xi1>, vector<8x128xf32>
      %cst_24 = arith.constant dense<0.000000e+00> : vector<8xf32>
      %43 = vector.multi_reduction <add>, %42, %cst_24 [1] : vector<8x128xf32> to vector<8xf32>
      %44 = vector.shape_cast %43 : vector<8xf32> to vector<8x1xf32>
      %45 = math.log %44 : vector<8x1xf32>
      %46 = vector.broadcast %45 : vector<8x1xf32> to vector<8x128xf32>
      %47 = arith.subf %39, %46 : vector<8x128xf32>
      %c0_25 = arith.constant 0 : index
      %c0_26 = arith.constant 0 : index
      %48 = vector.load %arg7[%c0_25, %c0_26] : memref<8x128xf32, #tpu.memory_space<vmem>>, vector<8x128xf32>
      tpu.vector_store %arg7[%c0_25, %c0_26], %47 {strides = array<i32>} : memref<8x128xf32, #tpu.memory_space<vmem>>, vector<8x128xf32>,
    } else {
    }
    return
  }
  func.func @transform_0(%arg0: i32, %arg1: i32) -> (i32, i32) {
    %c0_i32 = arith.constant 0 : i32
    return %arg0, %arg1 : i32, i32
  }
  func.func @transform_1(%arg0: i32, %arg1: i32) -> (i32, i32) {
    %c0_i32 = arith.constant 0 : i32
    %c0_i32_0 = arith.constant 0 : i32
    return %arg1, %c0_i32 : i32, i32
  }
  func.func @transform_2(%arg0: i32, %arg1: i32) -> (i32, i32) {
    %c0_i32 = arith.constant 0 : i32
    %c0_i32_0 = arith.constant 0 : i32
    %c0_i32_1 = arith.constant 0 : i32
    return %c0_i32, %c0_i32_0 : i32, i32
  }
  func.func @transform_3(%arg0: i32, %arg1: i32) -> (i32, i32) {
    %c0_i32 = arith.constant 0 : i32
    %c0_i32_0 = arith.constant 0 : i32
    %c0_i32_1 = arith.constant 0 : i32
    return %c0_i32, %c0_i32_0 : i32, i32
  }
  func.func @transform_4(%arg0: i32, %arg1: i32) -> (i32, i32) {
    %c0_i32 = arith.constant 0 : i32
    %c0_i32_0 = arith.constant 0 : i32
    %c0_i32_1 = arith.constant 0 : i32
    return %c0_i32, %c0_i32_0 : i32, i32
  }
  func.func @transform_5(%arg0: i32, %arg1: i32) -> (i32, i32) {
    %c0_i32 = arith.constant 0 : i32
    %c0_i32_0 = arith.constant 0 : i32
    return %arg0, %c0_i32 : i32, i32
  }
}

</mosaic_0001>

<bundles_post_ra>
// kernel: classifier_forward.1
= control target key start
LH: loop header
LB: loop body
LE: loop exit
PB: predicated region body
PF: predicated region fallthrough
CT: control target
= control target key end

     0   :  { %10 = vsyncpa [#allocation4], 0  ;;  %s1035_s0 = inlined_call_operand.vmem [shape: bf16[8,512], index: 0, kind: input, shape index: {}]   ;;  %s1036_s1 = inlined_call_operand.hbm [shape: bf16[512,256], index: 1, kind: input, shape index: {}]   ;;  %s1037_s2 = inlined_call_operand.vmem [shape: f32[1,256], index: 2, kind: input, shape index: {}]   ;;  %s1038_s3 = inlined_call_operand.hbm [shape: bf16[128,128], index: 3, kind: input, shape index: {}]   ;;  %s1039_s4 = inlined_call_operand.vmem [shape: f32[1,128], index: 4, kind: input, shape index: {}]   ;;  %s1040_s5 = inlined_call_operand.vmem [shape: f32[8,128], index: 5, kind: output, shape index: {}]  }
   0x1   :  { %11 = vsyncpa [#allocation6], 0  ;;  %s973_s18 = smov [#allocation3]  }
   0x2   :  { %s19_s19 = sshll.u32 %s973_s18, 4  ;;  %s20_s19 = int_to_ptr.vmem [resolvable:$true] %s19_s19 }
   0x3   :  { %s937_s20 = scalar_lea.vmem %s20_s19, 8192  ;;  %p942_p1 = scmp.lt.s32.totalorder %s20_s19, %s20_s19 }
   0x4   :  { %p938_p0 = scmp.ne.s32.totalorder %s20_s19, %s937_s20  ;;  %p943_p2 = scmp.lt.s32.totalorder %s937_s20, %s937_s20 }
   0x6   :  { %p944_p3 = por %p943_p2, %p942_p1 }
   0x8   :  { %p945_p4 = pnand %p944_p3, %p938_p0 }
   0xa   :  { %948 = shalt.err (!%p945_p4)
}
   0xb   :  { %s974_s21 = smov 128   ;;  %s975_s22 = smov 8  }
   0xc   :  { %25 = dma.hbm_to_vmem [thread:$0]  %s1036_s1, 8192, %s20_s19, [#allocation4], %s974_s21, %s974_s21, %s975_s22  }
   0xd   :  { %s976_s25 = smov [#allocation5]  }
   0xe   :  { %s33_s26 = sshll.u32 %s976_s25, 4  ;;  %s34_s26 = int_to_ptr.vmem [resolvable:$true] %s33_s26 }
   0xf   :  { %s957_s27 = scalar_lea.vmem %s34_s26, 1024  ;;  %p962_p6 = scmp.lt.s32.totalorder %s34_s26, %s34_s26 }
  0x10   :  { %p958_p5 = scmp.ne.s32.totalorder %s34_s26, %s957_s27  ;;  %p963_p7 = scmp.lt.s32.totalorder %s957_s27, %s957_s27 }
  0x12   :  { %p964_p8 = por %p963_p7, %p962_p6 }
  0x14   :  { %p965_p9 = pnand %p964_p8, %p958_p5 }
  0x16   :  { %968 = shalt.err (!%p965_p9)
}
  0x17   :  { %s977_s28 = smov 64   ;;  %s978_s29 = smov 4  }
  0x18   :  { %39 = dma.hbm_to_vmem [thread:$0]  %s1038_s3, 1024, %s34_s26, [#allocation6], %s977_s28, %s977_s28, %s978_s29  }
  0x19   :  { %969 = dma.done.wait [#allocation4], 8192  }
  0x1a   :  { %970 = vsyncadd [#allocation4], 4294959104 }
  0x1b   :  { %971 = dma.done.wait [#allocation6], 1024  }
  0x1c   :  { %972 = vsyncadd [#allocation6], 4294966272  ;;  %v817_v0 = vld [vmem:[#allocation3 + $0x74] ss:$8 sps:$4 sm:$0xff]   ;;  %v821_v2 = vld [vmem:[#allocation3 + $0x70] ss:$8 sps:$4 sm:$0xff]  }
  0x1d   :  { %v819_v1 = vld [vmem:[#allocation3 + $0x174] ss:$8 sps:$4 sm:$0xff]   ;;  %457 = vmatprep.subr.bf16.mxu0 %v817_v0  ;;  %v822_v3 = vld [vmem:[#allocation3 + $0x170] ss:$8 sps:$4 sm:$0xff]   ;;  %v823_v4 = vld [vmem:[#allocation3 + $0x64] ss:$8 sps:$4 sm:$0xff]  }
  0x1e   :  { %498 = vmatprep.subr.bf16.mxu1 %v819_v1  ;;  %458 = vmatpush1.bf16.msra.mxu0 %v821_v2  ;;  %v825_v5 = vld [vmem:[#allocation3 + $0x164] ss:$8 sps:$4 sm:$0xff]   ;;  %v827_v6 = vld [vmem:[#allocation3 + $0x60] ss:$8 sps:$4 sm:$0xff]   ;;  %v829_v8 = vld [vmem:[#allocation3 + $0x54] ss:$8 sps:$4 sm:$0xff]  }
  0x1f   :  { %499 = vmatpush1.bf16.msra.mxu1 %v822_v3  ;;  %459 = vmatprep.subr.bf16.mxu0 %v823_v4  ;;  %v828_v7 = vld [vmem:[#allocation3 + $0x160] ss:$8 sps:$4 sm:$0xff]   ;;  %v831_v9 = vld [vmem:[#allocation3 + $0x154] ss:$8 sps:$4 sm:$0xff]   ;;  %v833_v10 = vld [vmem:[#allocation3 + $0x50] ss:$8 sps:$4 sm:$0xff]  }
  0x20   :  { %500 = vmatprep.subr.bf16.mxu1 %v825_v5  ;;  %v834_v11 = vld [vmem:[#allocation3 + $0x150] ss:$8 sps:$4 sm:$0xff]   ;;  %v835_v12 = vld [vmem:[#allocation3 + $0x44] ss:$8 sps:$4 sm:$0xff]   ;;  %v839_v14 = vld [vmem:[#allocation3 + $0x40] ss:$8 sps:$4 sm:$0xff]  }
  0x21   :  { %v837_v13 = vld [vmem:[#allocation3 + $0x144] ss:$8 sps:$4 sm:$0xff]   ;;  %v840_v15 = vld [vmem:[#allocation3 + $0x140] ss:$8 sps:$4 sm:$0xff]   ;;  %v841_v16 = vld [vmem:[#allocation3 + $0x34] ss:$8 sps:$4 sm:$0xff]  }
  0x22   :  { %460 = vmatpush1.bf16.msra.mxu0 %v827_v6  ;;  %v843_v17 = vld [vmem:[#allocation3 + $0x134] ss:$8 sps:$4 sm:$0xff]   ;;  %v845_v18 = vld [vmem:[#allocation3 + $0x30] ss:$8 sps:$4 sm:$0xff]   ;;  %v847_v20 = vld [vmem:[#allocation3 + $0x24] ss:$8 sps:$4 sm:$0xff]  }
  0x23   :  { %501 = vmatpush1.bf16.msra.mxu1 %v828_v7  ;;  %461 = vmatprep.subr.bf16.mxu0 %v829_v8  ;;  %v846_v19 = vld [vmem:[#allocation3 + $0x130] ss:$8 sps:$4 sm:$0xff]   ;;  %v849_v21 = vld [vmem:[#allocation3 + $0x124] ss:$8 sps:$4 sm:$0xff]   ;;  %v851_v22 = vld [vmem:[#allocation3 + $0x20] ss:$8 sps:$4 sm:$0xff]  }
  0x24   :  { %502 = vmatprep.subr.bf16.mxu1 %v831_v9  ;;  %v852_v23 = vld [vmem:[#allocation3 + $0x120] ss:$8 sps:$4 sm:$0xff]   ;;  %v853_v24 = vld [vmem:[#allocation3 + $0x14] ss:$8 sps:$4 sm:$0xff]   ;;  %v857_v26 = vld [vmem:[#allocation3 + $0x10] ss:$8 sps:$4 sm:$0xff]  }
  0x25   :  { %v855_v25 = vld [vmem:[#allocation3 + $0x114] ss:$8 sps:$4 sm:$0xff]   ;;  %v858_v27 = vld [vmem:[#allocation3 + $0x110] ss:$8 sps:$4 sm:$0xff]   ;;  %v859_v28 = vld [vmem:[#allocation3 + $0x4] ss:$8 sps:$4 sm:$0xff]  }
  0x26   :  { %462 = vmatpush1.bf16.msra.mxu0 %v833_v10  ;;  %v861_v29 = vld [vmem:[#allocation3 + $0x104] ss:$8 sps:$4 sm:$0xff]   ;;  %v863_v30 = vld [vmem:[#allocation3] ss:$8 sps:$4 sm:$0xff]   ;;  %v865_v32 = vld [vmem:[#allocation3 + $0xf4] ss:$8 sps:$4 sm:$0xff]  }
  0x27   :  { %503 = vmatpush1.bf16.msra.mxu1 %v834_v11  ;;  %463 = vmatprep.subr.bf16.mxu0 %v835_v12  ;;  %v864_v31 = vld [vmem:[#allocation3 + $0x100] ss:$8 sps:$4 sm:$0xff]   ;;  %v867_v33 = vld [vmem:[#allocation3 + $0x1f4] ss:$8 sps:$4 sm:$0xff]   ;;  %v869_v34 = vld [vmem:[#allocation3 + $0xf0] ss:$8 sps:$4 sm:$0xff]  }
  0x28   :  { %504 = vmatprep.subr.bf16.mxu1 %v837_v13  ;;  %v870_v35 = vld [vmem:[#allocation3 + $0x1f0] ss:$8 sps:$4 sm:$0xff]   ;;  %v871_v36 = vld [vmem:[#allocation3 + $0xe4] ss:$8 sps:$4 sm:$0xff]   ;;  %v875_v38 = vld [vmem:[#allocation3 + $0xe0] ss:$8 sps:$4 sm:$0xff]  }
  0x29   :  { %v873_v37 = vld [vmem:[#allocation3 + $0x1e4] ss:$8 sps:$4 sm:$0xff]   ;;  %v876_v39 = vld [vmem:[#allocation3 + $0x1e0] ss:$8 sps:$4 sm:$0xff]   ;;  %v877_v40 = vld [vmem:[#allocation3 + $0xd4] ss:$8 sps:$4 sm:$0xff]  }
  0x2a   :  { %464 = vmatpush1.bf16.msra.mxu0 %v839_v14  ;;  %v879_v41 = vld [vmem:[#allocation3 + $0x1d4] ss:$8 sps:$4 sm:$0xff]   ;;  %v881_v42 = vld [vmem:[#allocation3 + $0xd0] ss:$8 sps:$4 sm:$0xff]   ;;  %v883_v44 = vld [vmem:[#allocation3 + $0xc4] ss:$8 sps:$4 sm:$0xff]  }
  0x2b   :  { %505 = vmatpush1.bf16.msra.mxu1 %v840_v15  ;;  %465 = vmatprep.subr.bf16.mxu0 %v841_v16  ;;  %v882_v43 = vld [vmem:[#allocation3 + $0x1d0] ss:$8 sps:$4 sm:$0xff]   ;;  %v885_v45 = vld [vmem:[#allocation3 + $0x1c4] ss:$8 sps:$4 sm:$0xff]   ;;  %v887_v46 = vld [vmem:[#allocation3 + $0xc0] ss:$8 sps:$4 sm:$0xff]   ;;  %v550_v15 = vlaneseq }
  0x2c   :  { %506 = vmatprep.subr.bf16.mxu1 %v843_v17  ;;  %v888_v47 = vld [vmem:[#allocation3 + $0x1c0] ss:$8 sps:$4 sm:$0xff]   ;;  %v889_v51 = vld [vmem:[#allocation3 + $0xb4] ss:$8 sps:$4 sm:$0xff]   ;;  %v893_v54 = vld [vmem:[#allocation3 + $0xb0] ss:$8 sps:$4 sm:$0xff]  }
  0x2d   :  { %v57_v48 = vld [vmem:[%s1035_s0] sm:$0xff]  ;;  %v58_v50 = vld [vmem:[%s1035_s0 + $0x8] sm:$0xff]  ;;  %v891_v53 = vld [vmem:[#allocation3 + $0x1b4] ss:$8 sps:$4 sm:$0xff]   ;;  %v979_v7 = vmov 0.0   ;;  %vm980_vm0 = vmmov 0  }
  0x2e   :  { %466 = vmatpush1.bf16.msra.mxu0 %v845_v18  ;;  %v704_v49 = vcombine.high %v57_v48, %v57_v48  ;;  %v706_v52 = vcombine.high %v58_v50, %v58_v50  ;;  %v894_v55 = vld [vmem:[#allocation3 + $0x1b0] ss:$8 sps:$4 sm:$0xff]   ;;  %v895_v56 = vld [vmem:[#allocation3 + $0xa4] ss:$8 sps:$4 sm:$0xff]   ;;  %v899_v58 = vld [vmem:[#allocation3 + $0xa0] ss:$8 sps:$4 sm:$0xff]   ;;  %v703_v4 = vcombine.low %v57_v48, %v57_v48  ;;  %v705_v5 = vcombine.low %v58_v50, %v58_v50 }
  0x2f   :  { %507 = vmatpush1.bf16.msra.mxu1 %v846_v19  ;;  %467 = vmatprep.subr.bf16.mxu0 %v847_v20  ;;  %v897_v57 = vld [vmem:[#allocation3 + $0x1a4] ss:$8 sps:$4 sm:$0xff]   ;;  %v900_v59 = vld [vmem:[#allocation3 + $0x1a0] ss:$8 sps:$4 sm:$0xff]   ;;  %v901_v60 = vld [vmem:[#allocation3 + $0x94] ss:$8 sps:$4 sm:$0xff]  }
  0x30   :  { %508 = vmatprep.subr.bf16.mxu1 %v849_v21  ;;  %489 = vmatprep.mubr.bf16.mxu0 %v704_v49  ;;  %v903_v61 = vld [vmem:[#allocation3 + $0x194] ss:$8 sps:$4 sm:$0xff]   ;;  %v905_v62 = vld [vmem:[#allocation3 + $0x90] ss:$8 sps:$4 sm:$0xff]   ;;  %v907_v0 = vld [vmem:[#allocation3 + $0x84] ss:$8 sps:$4 sm:$0xff]  }
  0x31   :  { %530 = vmatprep.mubr.bf16.mxu1 %v706_v52  ;;  %v906_v63 = vld [vmem:[#allocation3 + $0x190] ss:$8 sps:$4 sm:$0xff]   ;;  %v909_v1 = vld [vmem:[#allocation3 + $0x184] ss:$8 sps:$4 sm:$0xff]   ;;  %v911_v2 = vld [vmem:[#allocation3 + $0x80] ss:$8 sps:$4 sm:$0xff]  }
  0x32   :  { %468 = vmatpush1.bf16.msra.mxu0 %v851_v22  ;;  %v912_v3 = vld [vmem:[#allocation3 + $0x180] ss:$8 sps:$4 sm:$0xff]   ;;  %v917_v6 = vld [vmem:[#allocation5 + $0x38] sm:$0xff]   ;;  %v918_v8 = vld [vmem:[#allocation5 + $0x30] sm:$0xff]   ;;  %v551_v16 = vshrl.u32 %v550_v15, 7 }
  0x33   :  { %509 = vmatpush1.bf16.msra.mxu1 %v852_v23  ;;  %469 = vmatprep.subr.bf16.mxu0 %v853_v24  ;;  %v919_v9 = vld [vmem:[#allocation5 + $0x28] sm:$0xff]   ;;  %v920_v10 = vld [vmem:[#allocation5 + $0x20] sm:$0xff]   ;;  %v921_v11 = vld [vmem:[#allocation5 + $0x18] sm:$0xff]  }
  0x34   :  { %510 = vmatprep.subr.bf16.mxu1 %v855_v25  ;;  %v922_v12 = vld [vmem:[#allocation5 + $0x10] sm:$0xff]   ;;  %v923_v13 = vld [vmem:[#allocation5 + $0x8] sm:$0xff]   ;;  %v924_v14 = vld [vmem:[#allocation5] sm:$0xff]   ;;  %v552_v17 = vsub.s32 0, %v551_v16  ;;  %v556_v19 = vsub.s32 1, %v551_v16 }
  0x35   :  { %v548_v18 = vld [vmem:[%s1037_s2] sm:$0x3] }
  0x36   :  { %470 = vmatpush1.bf16.msra.mxu0 %v857_v26  ;;  %v553_v20 = vrot.slane %v548_v18, %v552_v17  ;;  %v557_v24 = vrot.slane %v548_v18, %v556_v19 }
  0x37   :  { %511 = vmatpush1.bf16.msra.mxu1 %v858_v27  ;;  %471 = vmatprep.subr.bf16.mxu0 %v859_v28 }
  0x38   :  { %512 = vmatprep.subr.bf16.mxu1 %v861_v29 }
  0x3a   :  { %472 = vmatpush1.bf16.msra.mxu0 %v863_v30 }
  0x3b   :  { %513 = vmatpush1.bf16.msra.mxu1 %v864_v31  ;;  %473 = vmatprep.subr.bf16.mxu0 %v865_v32 }
  0x3c   :  { %514 = vmatprep.subr.bf16.mxu1 %v867_v33 }
  0x3e   :  { %474 = vmatpush2.bf16.msra.mxu0 %v869_v34 }
  0x3f   :  { %515 = vmatpush2.bf16.msra.mxu1 %v870_v35  ;;  %475 = vmatprep.subr.bf16.mxu0 %v871_v36 }
  0x40   :  { %516 = vmatprep.subr.bf16.mxu1 %v873_v37 }
  0x42   :  { %476 = vmatpush2.bf16.msra.mxu0 %v875_v38  ;;  %v771_v38 = vld [vmem:[%s1039_s4] ss:$0 sm:$0xff] }
  0x43   :  { %517 = vmatpush2.bf16.msra.mxu1 %v876_v39  ;;  %477 = vmatprep.subr.bf16.mxu0 %v877_v40 }
  0x44   :  { %518 = vmatprep.subr.bf16.mxu1 %v879_v41 }
  0x46   :  { %478 = vmatpush2.bf16.msra.mxu0 %v881_v42 }
  0x47   :  { %519 = vmatpush2.bf16.msra.mxu1 %v882_v43  ;;  %479 = vmatprep.subr.bf16.mxu0 %v883_v44 }
  0x48   :  { %520 = vmatprep.subr.bf16.mxu1 %v885_v45  ;;  %v682_v45 = vand.u32 127, %v550_v15 }
  0x4a   :  { %480 = vmatpush2.bf16.msra.mxu0 %v887_v46  ;;  %vm683_vm1 = vcmp.lt.s32.totalorder %v682_v45, 4 }
  0x4b   :  { %521 = vmatpush2.bf16.msra.mxu1 %v888_v47  ;;  %481 = vmatprep.subr.bf16.mxu0 %v889_v51 }
  0x4c   :  { %522 = vmatprep.subr.bf16.mxu1 %v891_v53 }
  0x4e   :  { %482 = vmatpush2.bf16.msra.mxu0 %v893_v54 }
  0x4f   :  { %523 = vmatpush2.bf16.msra.mxu1 %v894_v55  ;;  %483 = vmatprep.subr.bf16.mxu0 %v895_v56 }
  0x50   :  { %524 = vmatprep.subr.bf16.mxu1 %v897_v57 }
  0x52   :  { %484 = vmatpush2.bf16.msra.mxu0 %v899_v58 }
  0x53   :  { %525 = vmatpush2.bf16.msra.mxu1 %v900_v59  ;;  %485 = vmatprep.subr.bf16.mxu0 %v901_v60 }
  0x54   :  { %526 = vmatprep.subr.bf16.mxu1 %v903_v61 }
  0x56   :  { %486 = vmatpush2.bf16.msra.mxu0 %v905_v62 }
  0x57   :  { %527 = vmatpush2.bf16.msra.mxu1 %v906_v63  ;;  %487 = vmatprep.subr.bf16.mxu0 %v907_v0 }
  0x58   :  { %528 = vmatprep.subr.bf16.mxu1 %v909_v1 }
  0x5a   :  { %488 = vmatpush2.bf16.msra.mxu0 %v911_v2 }
  0x5b   :  { %529 = vmatpush2.bf16.msra.mxu1 %v912_v3  ;;  %789 = vmatprep.subr.bf16.mxu0 %v979_v7 }
  0x5d   :  { %490 = vmatmul.mubr.bf16.vlgmr.msra.gmra.mxu0 %v703_v4 }
  0x5e   :  { %531 = vmatmul.mubr.bf16.vlgmr.msra.gmra.mxu1 %v705_v5  ;;  %790 = vmatpush3.bf16.msra.mxu0 %v917_v6 }
  0x5f   :  { %791 = vmatprep.subr.bf16.mxu0 %v979_v7  ;;  %805 = vmatprep.mubr.msk.bf16.mxu0 %vm980_vm0, %v979_v7 }
  0x62   :  { %792 = vmatpush3.bf16.msra.mxu0 %v918_v8 }
  0x63   :  { %793 = vmatprep.subr.bf16.mxu0 %v979_v7 }
  0x66   :  { %794 = vmatpush3.bf16.msra.mxu0 %v919_v9 }
  0x67   :  { %795 = vmatprep.subr.bf16.mxu0 %v979_v7 }
  0x6a   :  { %796 = vmatpush3.bf16.msra.mxu0 %v920_v10 }
  0x6b   :  { %797 = vmatprep.subr.bf16.mxu0 %v979_v7 }
  0x6e   :  { %798 = vmatpush3.bf16.msra.mxu0 %v921_v11 }
  0x6f   :  { %799 = vmatprep.subr.bf16.mxu0 %v979_v7 }
  0x72   :  { %800 = vmatpush3.bf16.msra.mxu0 %v922_v12 }
  0x73   :  { %801 = vmatprep.subr.bf16.mxu0 %v979_v7 }
  0x76   :  { %802 = vmatpush3.bf16.msra.mxu0 %v923_v13 }
  0x77   :  { %803 = vmatprep.subr.bf16.mxu0 %v979_v7 }
  0x7a   :  { %804 = vmatpush3.bf16.msra.mxu0 %v924_v14 }
 0x11d   :  { %v491_v21 = vpop.f32.mrf.mxu0 }
 0x11e   :  { %v532_v22 = vpop.f32.mrf.mxu1 }
 0x11f   :  { %v533_v23 = vadd.f32 %v532_v22, %v491_v21  ;;  %v493_v25 = vpop.f32.mrf.mxu0 }
 0x120   :  { %v534_v26 = vpop.f32.mrf.mxu1 }
 0x121   :  { %v560_v27 = vadd.f32 %v553_v20, %v533_v23  ;;  %v535_v28 = vadd.f32 %v534_v26, %v493_v25  ;;  %v495_v29 = vpop.f32.mrf.mxu0 }
 0x122   :  { %v536_v30 = vpop.f32.mrf.mxu1 }
 0x123   :  { %v561_v31 = vadd.f32 %v557_v24, %v535_v28  ;;  %v496_v32 = vpop.f32.mrf.mxu0  ;;  %v562_v34 = vmax.f32 %v560_v27, 0.0 }
 0x124   :  { %v537_v33 = vpop.f32.mrf.mxu1 }
 0x125   :  { %v563_v35 = vmax.f32 %v561_v31, 0.0 }
 0x127   :  { %v564_v36 = vmax.f32 %v562_v34, %v563_v35 }
 0x129   :  { %v565_v37 = vpack.c.bf16 %v564_v36, %v564_v36 }
 0x12b   :  { %806 = vmatmul.mubr.bf16.vlgmr.msra.gmra.mxu0 %v565_v37 }
 0x1eb   :  { %v671_v39 = vpop.f32.mrf.mxu0 }
 0x1ec   :  { %v672_v40 = vadd.f32 %v771_v38, %v671_v39 }
 0x1ed   :  { %v807_v41 = vpop.f32.mrf.mxu0 }
 0x1ee   :  { %v677_v42 = vmax.f32 %v672_v40, 0.0 }
 0x1ef   :  { %v674_v43 = vpop.f32.mrf.mxu0 }
 0x1f0   :  { %678 = vrot.lane.b32.xlu0 %v677_v42, %s977_s28 }
 0x1f1   :  { %v808_v44 = vpop.f32.mrf.mxu0 }
 0x262   :  { %v679_v46 = vpop.permute.xlu0 %678 }
 0x263   :  { %v680_v47 = vmax.f32 %v677_v42, %v679_v46 }
 0x265   :  { %v684_v48 = vsel %vm683_vm1, %v680_v47, -inf }
 0x266   :  { %685 = vmax.xlane.f32.xlu0 %v684_v48 }
 0x2ef   :  { %v686_v49 = vpop.xlane.xlu0 %685 }
 0x2f0   :  { %v687_v50 = vsub.f32 %v680_v47, %v686_v49 }
 0x2f2   :  { %v688_v51 = vmul.f32 1.442695, %v687_v50 }
 0x2f4   :  { %925 = vpow2.f32 %v688_v51 }
 0x301   :  { %v926_v52 = vpop.eup %925 }
 0x302   :  { %v690_v53 = vsel %vm683_vm1, %v926_v52, 0.0 }
 0x303   :  { %691 = vadd.xlane.f32.xlu1 %v690_v53 }
 0x38c   :  { %v692_v54 = vpop.xlane.xlu1 %691 }
 0x38d   :  { %927 = vlog2.f32 %v692_v54 }
 0x39a   :  { %v928_v55 = vpop.eup %927 }
 0x39b   :  { %v694_v56 = vmul.f32 0.6931472, %v928_v55 }
 0x39d   :  { %v695_v57 = vsub.f32 %v687_v50, %v694_v56 }
 0x39f   :  { %696 = vst [vmem:[%s1040_s5] sm:$0xff] %v695_v57 }
 0x3a0   :  { %701 = vsyncpa [#allocation4], 1 }
 0x3a1   :  { %702 = vsyncpa [#allocation6], 1 }

</bundles_post_ra>
